<compile_context>
chip_gen: v7x
topology: tpu7x:2x2x1
jax: 0.10.0
libtpu: 0.0.40
codegen_flags: <defaults>
</compile_context>

<pallas_src>
import functools

import jax
import jax.numpy as jnp
from jax.experimental import pallas as pl
from jax.experimental.pallas import tpu as pltpu


# ----------------------------------------------------------------------------
# helpers
# ----------------------------------------------------------------------------
def _round_up(a, m):
    return (a + m - 1) // m * m


def _pad2d(a, rows, cols):
    r, c = a.shape
    if r == rows and c == cols:
        return a
    return jnp.pad(a, ((0, rows - r), (0, cols - c)))


def _default_kv_tile():
    """v6e/v7x MXUs are 256 deep -> bigger kv tiles fill the p@v contraction."""
    try:
        kind = jax.devices()[0].device_kind.lower()
    except Exception:
        return 128
    return 256 if any(t in kind for t in ("v6", "v7", "7x")) else 128


# ----------------------------------------------------------------------------
# tiled linear projection kernels (torch (out, in) weight layout, no .T)
# ----------------------------------------------------------------------------
def _linear_kernel(x_ref, w_ref, o_ref, *, compute_dtype):
    x = x_ref[...].astype(compute_dtype)          # (tm, K)
    w = w_ref[...].astype(compute_dtype)          # (tn, K)  torch layout
    o_ref[...] = jax.lax.dot_general(
        x, w, (((1,), (1,)), ((), ())),
        preferred_element_type=jnp.float32).astype(o_ref.dtype)


def _linear_bias_kernel(x_ref, w_ref, b_ref, o_ref, *, compute_dtype):
    x = x_ref[...].astype(compute_dtype)
    w = w_ref[...].astype(compute_dtype)
    acc = jax.lax.dot_general(
        x, w, (((1,), (1,)), ((), ())), preferred_element_type=jnp.float32)
    o_ref[...] = (acc + b_ref[...]).astype(o_ref.dtype)


def linear_pallas(x, w, b=None, *, tm_max=256, tn_max=512,
                  compute_dtype=jnp.bfloat16):
    """x: (M, K), w: torch-layout (N, K), b: (N,) or None  ->  x @ w^T (+ b)."""
    M, K = x.shape
    N, Kw = w.shape
    assert K == Kw

    Mp = _round_up(M, 8)
    tm = min(tm_max, Mp)
    Mp = _round_up(Mp, tm)

    Np = _round_up(N, 128)                        # lane-dense output columns
    tn = min(tn_max, Np)
    Np = _round_up(Np, tn)

    xp = _pad2d(x, Mp, K)
    wp = _pad2d(w, Np, K)

    # N is the OUTER grid axis: the (tn, K) weight slab's block index only
    # depends on it, so it is DMA'd once per j and stays VMEM-resident across
    # all row tiles (no per-row-tile re-streaming of W).
    in_specs = [
        pl.BlockSpec((tm, K), lambda j, i: (i, 0)),
        pl.BlockSpec((tn, K), lambda j, i: (j, 0)),
    ]
    args = [xp, wp]
    if b is not None:
        bp = jnp.pad(b, (0, Np - N)).reshape(1, Np)
        in_specs.append(pl.BlockSpec((1, tn), lambda j, i: (0, j)))
        args.append(bp)
        kernel = functools.partial(_linear_bias_kernel, compute_dtype=compute_dtype)
    else:
        kernel = functools.partial(_linear_kernel, compute_dtype=compute_dtype)

    bytes_accessed = (Mp * K + Np * K + Mp * Np + (Np if b is not None else 0)) * 4
    out = pl.pallas_call(
        kernel,
        out_shape=jax.ShapeDtypeStruct((Mp, Np), x.dtype),
        grid_spec=pltpu.PrefetchScalarGridSpec(
            num_scalar_prefetch=0,
            grid=(Np // tn, Mp // tm),
            in_specs=in_specs,
            out_specs=pl.BlockSpec((tm, tn), lambda j, i: (i, j)),
        ),
        compiler_params=pltpu.CompilerParams(
            dimension_semantics=("parallel", "parallel")),
        cost_estimate=pl.CostEstimate(
            flops=2 * Mp * K * Np, transcendentals=0,
            bytes_accessed=bytes_accessed),
    )(*args)

    return out[:M, :N]


# ----------------------------------------------------------------------------
# flash-attention core on the fused-head (B, N, heads*dim_head) layout
# ----------------------------------------------------------------------------
def _attn_kernel(q_ref, k_ref, v_ref, o_ref, qs_sc, m_sc, l_sc, acc_sc, *,
                 scale, dim_head, hpb, kv_len, tk, compute_dtype):
    j = pl.program_id(3)
    d = dim_head

    @pl.when(j == 0)
    def _init():
        # Fold the softmax scale into q once per q tile (not once per kv step).
        qs_sc[...] = (q_ref[0] * scale).astype(qs_sc.dtype)
        m_sc[...] = jnp.full(m_sc.shape, -jnp.inf, dtype=m_sc.dtype)
        l_sc[...] = jnp.zeros(l_sc.shape, dtype=l_sc.dtype)
        acc_sc[...] = jnp.zeros(acc_sc.shape, dtype=acc_sc.dtype)

    qs = qs_sc[...]                               # (tq, hpb*d) pre-scaled
    k = k_ref[0].astype(compute_dtype)            # (tk, hpb*d)
    v = v_ref[0].astype(compute_dtype)            # (tk, hpb*d)

    ragged = (kv_len % tk) != 0                   # static Python bool
    if ragged:
        col = jax.lax.broadcasted_iota(jnp.int32, (1, tk), 1)
        kv_mask = col < (kv_len - j * tk)

    for h in range(hpb):                          # static loop over fused heads
        lo, hi = h * d, (h + 1) * d
        s = jax.lax.dot_general(                  # (tq, tk), f32 MXU accumulation
            qs[:, lo:hi], k[:, lo:hi], (((1,), (1,)), ((), ())),
            preferred_element_type=jnp.float32)
        if ragged:
            s = jnp.where(kv_mask, s, -1e30)      # mask padded kv tail
        m_prev = m_sc[h]                          # (tq, 1)
        m_new = jnp.maximum(m_prev, s.max(axis=-1, keepdims=True))
        alpha = jnp.exp(m_prev - m_new)
        p = jnp.exp(s - m_new)                    # (tq, tk)
        l_sc[h] = alpha * l_sc[h] + p.sum(axis=-1, keepdims=True)
        acc_sc[:, lo:hi] = alpha * acc_sc[:, lo:hi] + jnp.dot(
            p.astype(compute_dtype), v[:, lo:hi],
            preferred_element_type=jnp.float32)
        m_sc[h] = m_new

    @pl.when(j == pl.num_programs(3) - 1)
    def _finalize():
        approx = jnp.dtype(compute_dtype) != jnp.dtype(jnp.float32)
        for h in range(hpb):
            lo, hi = h * d, (h + 1) * d
            inv_l = pl.reciprocal(l_sc[h], approx=approx)   # EUP slot on fast path
            acc_sc[:, lo:hi] = acc_sc[:, lo:hi] * inv_l
        o_ref[0] = acc_sc[...].astype(o_ref.dtype)          # single lane-dense store


def flash_attention(q, kv, *, heads, dim_head, scale,
                    compute_dtype=jnp.bfloat16, tq_max=128, tk_max=None):
    """q: (B, Sq, heads*dim_head); kv: (B, Sk, 2*heads*dim_head) (k | v).

    Head split/merge and the k/v chunk are expressed purely via BlockSpec
    index_maps; output comes back in the same fused-head layout.
    """
    B, Sq, inner = q.shape
    _, Sk, inner2 = kv.shape
    assert inner == heads * dim_head and inner2 == 2 * inner

    # Heads per block so every flash block is lane-dense (last dim % 128 == 0).
    if dim_head % 128 == 0:
        hpb = 1
    else:
        assert 128 % dim_head == 0 and heads % (128 // dim_head) == 0, (
            "unsupported head geometry for the fused-head flash kernel")
        hpb = 128 // dim_head
    hd = hpb * dim_head
    ngroups = heads // hpb          # head-group grid extent; also v's block offset

    if tk_max is None:
        tk_max = _default_kv_tile()
    tq = min(tq_max, _round_up(Sq, 8))
    tk = min(tk_max, _round_up(Sk, 8))
    Sq_p = _round_up(Sq, tq)
    Sk_p = _round_up(Sk, tk)

    qp = q if Sq_p == Sq else jnp.pad(q, ((0, 0), (0, Sq_p - Sq), (0, 0)))
    kvp = kv if Sk_p == Sk else jnp.pad(kv, ((0, 0), (0, Sk_p - Sk), (0, 0)))

    kernel = functools.partial(
        _attn_kernel, scale=scale, dim_head=dim_head, hpb=hpb,
        kv_len=Sk, tk=tk, compute_dtype=compute_dtype)

    out = pl.pallas_call(
        kernel,
        out_shape=jax.ShapeDtypeStruct((B, Sq_p, inner), q.dtype),
        grid_spec=pltpu.PrefetchScalarGridSpec(
            num_scalar_prefetch=0,
            grid=(B, ngroups, Sq_p // tq, Sk_p // tk),
            in_specs=[
                pl.BlockSpec((1, tq, hd), lambda b, g, i, j: (b, i, g)),            # q
                pl.BlockSpec((1, tk, hd), lambda b, g, i, j: (b, j, g)),             # k (from kv)
                pl.BlockSpec((1, tk, hd), lambda b, g, i, j: (b, j, ngroups + g)),   # v (from kv)
            ],
            out_specs=pl.BlockSpec((1, tq, hd), lambda b, g, i, j: (b, i, g)),
            scratch_shapes=[
                pltpu.VMEM((tq, hd), compute_dtype),     # pre-scaled q tile
                pltpu.VMEM((hpb, tq, 1), jnp.float32),   # running max per head
                pltpu.VMEM((hpb, tq, 1), jnp.float32),   # running denom per head
                pltpu.VMEM((tq, hd), jnp.float32),       # output accumulator
            ]),
        compiler_params=pltpu.CompilerParams(
            dimension_semantics=("parallel", "parallel", "parallel", "arbitrary")),
        cost_estimate=pl.CostEstimate(
            flops=4 * B * heads * Sq_p * Sk_p * dim_head,
            transcendentals=B * heads * Sq_p * Sk_p,
            bytes_accessed=(q.size + 2 * kv.size + B * Sq_p * inner) * 4),
    )(qp, kvp, kvp)

    return out if Sq_p == Sq else out[:, :Sq, :]


# ----------------------------------------------------------------------------
# PerAttention forward
# ----------------------------------------------------------------------------
def per_attention(x, wq, wkv, wo, bo, *, heads, dim_head, context=None,
                  compute_dtype=jnp.bfloat16):
    """x: (B, Nq, query_dim).  Weights use torch Linear layout (out, in)."""
    context = x if context is None else context
    B, Nq, Dq = x.shape
    _, Nk, Dc = context.shape
    inner = heads * dim_head
    scale = dim_head ** (-0.5)
    out_dim = wo.shape[0]

    # Projections: weights consumed in (out, in) layout -> no transposes in HBM.
    q = linear_pallas(x.reshape(B * Nq, Dq), wq, compute_dtype=compute_dtype)
    kv = linear_pallas(context.reshape(B * Nk, Dc), wkv, compute_dtype=compute_dtype)

    # Attention directly on (B, N, heads*dim_head); k/v are read straight out of
    # the combined kv array by the BlockSpec index_maps (no chunk/transpose).
    o = flash_attention(q.reshape(B, Nq, inner), kv.reshape(B, Nk, 2 * inner),
                        heads=heads, dim_head=dim_head, scale=scale,
                        compute_dtype=compute_dtype)

    # TODO(synk): optional `mask` path and attention dropout are not
    # implemented (forward uses mask=None; dropout p=0.0 is identity at eval).
    out = linear_pallas(o.reshape(B * Nq, inner), wo, bo,
                        compute_dtype=compute_dtype)
    return out.reshape(B, Nq, out_dim)


# ----------------------------------------------------------------------------
# pure-JAX reference
# ----------------------------------------------------------------------------
def per_attention_reference(x, wq, wkv, wo, bo, *, heads, dim_head, context=None):
    context = x if context is None else context
    B, Nq, _ = x.shape
    Nk = context.shape[1]
    inner = heads * dim_head
    scale = dim_head ** (-0.5)

    q = x @ wq.T
    kv = context @ wkv.T
    k, v = kv[..., :inner], kv[..., inner:]

    def to_heads(t, n):
        return t.reshape(B, n, heads, dim_head).transpose(0, 2, 1, 3)

    qh, kh, vh = to_heads(q, Nq), to_heads(k, Nk), to_heads(v, Nk)
    sim = jnp.einsum('bhid,bhjd->bhij', qh, kh) * scale
    attn = jax.nn.softmax(sim, axis=-1)
    o = jnp.einsum('bhij,bhjd->bhid', attn, vh)
    o = o.transpose(0, 2, 1, 3).reshape(B, Nq, inner)
    return o @ wo.T + bo


# ----------------------------------------------------------------------------
if __name__ == "__main__":
    B, N, query_dim = 2, 8, 32
    heads, dim_head = 8, 64          # module defaults
    inner = heads * dim_head

    key = jax.random.PRNGKey(0)
    kx, kq, kkv, ko, kb = jax.random.split(key, 5)

    x = jax.random.normal(kx, (B, N, query_dim), dtype=jnp.float32)
    wq = jax.random.normal(kq, (inner, query_dim), dtype=jnp.float32) * (query_dim ** -0.5)
    wkv = jax.random.normal(kkv, (2 * inner, query_dim), dtype=jnp.float32) * (query_dim ** -0.5)
    wo = jax.random.normal(ko, (query_dim, inner), dtype=jnp.float32) * (inner ** -0.5)
    bo = jax.random.normal(kb, (query_dim,), dtype=jnp.float32) * 0.01

    ref = per_attention_reference(x, wq, wkv, wo, bo, heads=heads, dim_head=dim_head)

    # Exact path (f32 MXU operands) — tight numerics check against the reference.
    out_f32 = jax.block_until_ready(per_attention(
        x, wq, wkv, wo, bo, heads=heads, dim_head=dim_head,
        compute_dtype=jnp.float32))
    assert out_f32.shape == (B, N, query_dim), out_f32.shape
    assert jnp.allclose(out_f32, ref, atol=2e-3, rtol=2e-3), "f32 path mismatch vs JAX reference"

    # Fast path (bf16 MXU operands, f32 accumulation) — default; looser sanity check.
    out = jax.block_until_ready(per_attention(
        x, wq, wkv, wo, bo, heads=heads, dim_head=dim_head))
    assert out.shape == (B, N, query_dim), out.shape
    rel = jnp.linalg.norm(out - ref) / jnp.linalg.norm(ref)
    assert float(rel) < 8e-2, f"bf16 path relative error too large: {float(rel)}"

    print("KERNEL_OK")
</pallas_src>

<mosaic_0001>
module attributes {stable_mosaic.version = 11 : i64} {
  func.func @_linear_kernel(%arg0: i32, %arg1: i32, %arg2: memref<16x32xf32, #tpu.memory_space<vmem>>, %arg3: memref<512x32xf32, #tpu.memory_space<vmem>>, %arg4: memref<16x512xf32, #tpu.memory_space<vmem>>) attributes {dimension_semantics = [#tpu.dimension_semantics<parallel>, #tpu.dimension_semantics<parallel>], iteration_bounds = array<i64: 1, 1>, scalar_prefetch = 0 : i64, scratch_operands = 0 : i64, tpu.core_type = #tpu.core_type<tc>, window_params = [{transform_indices = @transform_0, window_bounds = array<i64: 16, 32>}, {transform_indices = @transform_1, window_bounds = array<i64: 512, 32>}, {transform_indices = @transform_2, window_bounds = array<i64: 16, 512>}]} {
    %c0 = arith.constant 0 : index
    %c0_0 = arith.constant 0 : index
    %0 = vector.load %arg2[%c0, %c0_0] : memref<16x32xf32, #tpu.memory_space<vmem>>, vector<16x32xf32>
    %c0_1 = arith.constant 0 : index
    %c0_2 = arith.constant 0 : index
    %1 = vector.load %arg3[%c0_1, %c0_2] : memref<512x32xf32, #tpu.memory_space<vmem>>, vector<512x32xf32>
    %cst = arith.constant dense<0.000000e+00> : vector<16x512xf32>
    %2 = tpu.matmul %0, %1, %cst {dimension_numbers = #tpu.dot_dimension_numbers<[1], [1], [0], [0], [0, 0, 1, 0], [], []>} : vector<16x32xf32>, vector<512x32xf32>, vector<16x512xf32> -> vector<16x512xf32>
    %c0_3 = arith.constant 0 : index
    %c0_4 = arith.constant 0 : index
    %3 = vector.load %arg4[%c0_3, %c0_4] : memref<16x512xf32, #tpu.memory_space<vmem>>, vector<16x512xf32>
    tpu.vector_store %arg4[%c0_3, %c0_4], %2 {strides = array<i32>} : memref<16x512xf32, #tpu.memory_space<vmem>>, vector<16x512xf32>,
    return
  }
  func.func @transform_0(%arg0: i32, %arg1: i32) -> (i32, i32) {
    %c0_i32 = arith.constant 0 : i32
    %c0_i32_0 = arith.constant 0 : i32
    return %arg1, %c0_i32 : i32, i32
  }
  func.func @transform_1(%arg0: i32, %arg1: i32) -> (i32, i32) {
    %c0_i32 = arith.constant 0 : i32
    %c0_i32_0 = arith.constant 0 : i32
    return %arg0, %c0_i32 : i32, i32
  }
  func.func @transform_2(%arg0: i32, %arg1: i32) -> (i32, i32) {
    %c0_i32 = arith.constant 0 : i32
    return %arg1, %arg0 : i32, i32
  }
}

</mosaic_0001>

<bundles_post_ra>
// kernel: tpu_custom_call.1
= control target key start
LH: loop header
LB: loop body
LE: loop exit
PB: predicated region body
PF: predicated region fallthrough
CT: control target
= control target key end

     0   :  { %vm78_vm0 = vcmask 261120   ;;  %s1030_s0 = inlined_call_operand.vmem [shape: f32[16,32], index: 0, kind: input, shape index: {}]   ;;  %s1031_s1 = inlined_call_operand.vmem [shape: f32[512,32], index: 1, kind: input, shape index: {}]   ;;  %s1032_s2 = inlined_call_operand.hbm [shape: f32[16,512], index: 2, kind: output, shape index: {}]  }
   0x1   :  { %v30_v0 = vld [vmem:[%s1031_s1 + $0x80] sm:$0xff]  ;;  %v31_v1 = vld [vmem:[%s1031_s1 + $0x88] sm:$0xff]  ;;  %vm747_vm1 = vmpackc.low %vm78_vm0, %vm78_vm0 }
   0x2   :  { %v62_v2 = vld [vmem:[%s1031_s1 + $0x180] sm:$0xff]  ;;  %v595_v3 = vpack.c.bf16 %v31_v1, %v30_v0  ;;  %v63_v5 = vld [vmem:[%s1031_s1 + $0x188] sm:$0xff]  ;;  %v32_v13 = vld [vmem:[%s1031_s1 + $0x90] sm:$0xff] }
   0x3   :  { %v14_v6 = vld [vmem:[%s1031_s1] sm:$0xff]  ;;  %v643_v7 = vpack.c.bf16 %v63_v5, %v62_v2  ;;  %v15_v8 = vld [vmem:[%s1031_s1 + $0x8] sm:$0xff]  ;;  %v33_v14 = vld [vmem:[%s1031_s1 + $0x98] sm:$0xff] }
   0x4   :  { %v46_v9 = vld [vmem:[%s1031_s1 + $0x100] sm:$0xff]  ;;  %v47_v10 = vld [vmem:[%s1031_s1 + $0x108] sm:$0xff]  ;;  %597 = vmatprep.subr.msk.bf16.mxu0 %vm747_vm1, %v595_v3  ;;  %v598_v11 = vpack.c.bf16 %v15_v8, %v14_v6  ;;  %v64_v15 = vld [vmem:[%s1031_s1 + $0x190] sm:$0xff]  ;;  %v601_v16 = vpack.c.bf16 %v33_v14, %v32_v13 }
   0x5   :  { %v646_v12 = vpack.c.bf16 %v47_v10, %v46_v9  ;;  %645 = vmatprep.subr.msk.bf16.mxu1 %vm747_vm1, %v643_v7  ;;  %v65_v17 = vld [vmem:[%s1031_s1 + $0x198] sm:$0xff]  ;;  %v16_v19 = vld [vmem:[%s1031_s1 + $0x10] sm:$0xff]  ;;  %v34_v23 = vld [vmem:[%s1031_s1 + $0xa0] sm:$0xff] }
   0x6   :  { %600 = vmatpush3.bf16.xpose.msk.msra.mxu0 %vm747_vm1, %v598_v11  ;;  %v649_v18 = vpack.c.bf16 %v65_v17, %v64_v15  ;;  %v17_v20 = vld [vmem:[%s1031_s1 + $0x18] sm:$0xff]  ;;  %v48_v21 = vld [vmem:[%s1031_s1 + $0x110] sm:$0xff]  ;;  %v35_v24 = vld [vmem:[%s1031_s1 + $0xa8] sm:$0xff] }
   0x7   :  { %648 = vmatpush3.bf16.xpose.msk.msra.mxu1 %vm747_vm1, %v646_v12  ;;  %603 = vmatprep.subr.msk.bf16.mxu0 %vm747_vm1, %v601_v16  ;;  %v49_v22 = vld [vmem:[%s1031_s1 + $0x118] sm:$0xff]  ;;  %v66_v25 = vld [vmem:[%s1031_s1 + $0x1a0] sm:$0xff]  ;;  %v67_v26 = vld [vmem:[%s1031_s1 + $0x1a8] sm:$0xff]  ;;  %v604_v27 = vpack.c.bf16 %v17_v20, %v16_v19  ;;  %v607_v29 = vpack.c.bf16 %v35_v24, %v34_v23 }
   0x8   :  { %651 = vmatprep.subr.msk.bf16.mxu1 %vm747_vm1, %v649_v18  ;;  %v652_v28 = vpack.c.bf16 %v49_v22, %v48_v21  ;;  %v655_v30 = vpack.c.bf16 %v67_v26, %v66_v25  ;;  %v18_v31 = vld [vmem:[%s1031_s1 + $0x20] sm:$0xff]  ;;  %v19_v32 = vld [vmem:[%s1031_s1 + $0x28] sm:$0xff]  ;;  %v36_v35 = vld [vmem:[%s1031_s1 + $0xb0] sm:$0xff] }
   0x9   :  { %v50_v33 = vld [vmem:[%s1031_s1 + $0x120] sm:$0xff]  ;;  %v51_v34 = vld [vmem:[%s1031_s1 + $0x128] sm:$0xff]  ;;  %v37_v36 = vld [vmem:[%s1031_s1 + $0xb8] sm:$0xff]  ;;  %v610_v39 = vpack.c.bf16 %v19_v32, %v18_v31 }
   0xa   :  { %v68_v37 = vld [vmem:[%s1031_s1 + $0x1b0] sm:$0xff]  ;;  %v69_v38 = vld [vmem:[%s1031_s1 + $0x1b8] sm:$0xff]  ;;  %v658_v40 = vpack.c.bf16 %v51_v34, %v50_v33  ;;  %v613_v41 = vpack.c.bf16 %v37_v36, %v36_v35  ;;  %v862_v46 = vld [vmem:[%s1030_s0] sm:$0xff] }
   0xb   :  { %v661_v42 = vpack.c.bf16 %v69_v38, %v68_v37  ;;  %v20_v43 = vld [vmem:[%s1031_s1 + $0x30] sm:$0xff]  ;;  %v21_v44 = vld [vmem:[%s1031_s1 + $0x38] sm:$0xff]  ;;  %v38_v48 = vld [vmem:[%s1031_s1 + $0xc0] sm:$0xff] }
   0xc   :  { %v52_v45 = vld [vmem:[%s1031_s1 + $0x130] sm:$0xff]  ;;  %v53_v47 = vld [vmem:[%s1031_s1 + $0x138] sm:$0xff] }
   0xe   :  { %606 = vmatpush3.bf16.xpose.msk.msra.mxu0 %vm747_vm1, %v604_v27 }
   0xf   :  { %654 = vmatpush3.bf16.xpose.msk.msra.mxu1 %vm747_vm1, %v652_v28  ;;  %609 = vmatprep.subr.msk.bf16.mxu0 %vm747_vm1, %v607_v29 }
  0x10   :  { %657 = vmatprep.subr.msk.bf16.mxu1 %vm747_vm1, %v655_v30 }
  0x16   :  { %612 = vmatpush3.bf16.xpose.msk.msra.mxu0 %vm747_vm1, %v610_v39 }
  0x17   :  { %660 = vmatpush3.bf16.xpose.msk.msra.mxu1 %vm747_vm1, %v658_v40  ;;  %615 = vmatprep.subr.msk.bf16.mxu0 %vm747_vm1, %v613_v41 }
  0x18   :  { %663 = vmatprep.subr.msk.bf16.mxu1 %vm747_vm1, %v661_v42 }
  0x19   :  { %7 = vsyncpa [#allocation3], 0  ;;  %v39_v49 = vld [vmem:[%s1031_s1 + $0xc8] sm:$0xff]  ;;  %v70_v50 = vld [vmem:[%s1031_s1 + $0x1c0] sm:$0xff]  ;;  %555 = vmatprep.mubr.msk.f32.mxu0 %vm78_vm0, %v862_v46  ;;  %591 = vmatprep.mubr.msk.f32.mxu1 %vm78_vm0, %v862_v46  ;;  %v616_v52 = vpack.c.bf16 %v21_v44, %v20_v43  ;;  %v664_v53 = vpack.c.bf16 %v53_v47, %v52_v45 }
  0x1a   :  { %v71_v51 = vld [vmem:[%s1031_s1 + $0x1c8] sm:$0xff]  ;;  %v619_v54 = vpack.c.bf16 %v39_v49, %v38_v48  ;;  %v22_v56 = vld [vmem:[%s1031_s1 + $0x40] sm:$0xff]  ;;  %v40_v60 = vld [vmem:[%s1031_s1 + $0xd0] sm:$0xff] }
  0x1b   :  { %v667_v55 = vpack.c.bf16 %v71_v51, %v70_v50  ;;  %v23_v57 = vld [vmem:[%s1031_s1 + $0x48] sm:$0xff]  ;;  %v54_v58 = vld [vmem:[%s1031_s1 + $0x140] sm:$0xff]  ;;  %v41_v61 = vld [vmem:[%s1031_s1 + $0xd8] sm:$0xff] }
  0x1c   :  { %v55_v59 = vld [vmem:[%s1031_s1 + $0x148] sm:$0xff]  ;;  %v72_v62 = vld [vmem:[%s1031_s1 + $0x1d0] sm:$0xff]  ;;  %v73_v63 = vld [vmem:[%s1031_s1 + $0x1d8] sm:$0xff]  ;;  %v622_v0 = vpack.c.bf16 %v23_v57, %v22_v56  ;;  %v625_v2 = vpack.c.bf16 %v41_v61, %v40_v60 }
  0x1d   :  { %v670_v1 = vpack.c.bf16 %v55_v59, %v54_v58  ;;  %v673_v3 = vpack.c.bf16 %v73_v63, %v72_v62  ;;  %v24_v5 = vld [vmem:[%s1031_s1 + $0x50] sm:$0xff]  ;;  %v25_v6 = vld [vmem:[%s1031_s1 + $0x58] sm:$0xff]  ;;  %v42_v9 = vld [vmem:[%s1031_s1 + $0xe0] sm:$0xff] }
  0x1e   :  { %618 = vmatpush3.bf16.xpose.msk.msra.mxu0 %vm747_vm1, %v616_v52  ;;  %v56_v7 = vld [vmem:[%s1031_s1 + $0x150] sm:$0xff]  ;;  %v57_v8 = vld [vmem:[%s1031_s1 + $0x158] sm:$0xff]  ;;  %v43_v10 = vld [vmem:[%s1031_s1 + $0xe8] sm:$0xff]  ;;  %v628_v13 = vpack.c.bf16 %v25_v6, %v24_v5 }
  0x1f   :  { %666 = vmatpush3.bf16.xpose.msk.msra.mxu1 %vm747_vm1, %v664_v53  ;;  %621 = vmatprep.subr.msk.bf16.mxu0 %vm747_vm1, %v619_v54  ;;  %v74_v11 = vld [vmem:[%s1031_s1 + $0x1e0] sm:$0xff]  ;;  %v75_v12 = vld [vmem:[%s1031_s1 + $0x1e8] sm:$0xff]  ;;  %v676_v14 = vpack.c.bf16 %v57_v8, %v56_v7  ;;  %v631_v15 = vpack.c.bf16 %v43_v10, %v42_v9  ;;  %v44_v21 = vld [vmem:[%s1031_s1 + $0xf0] sm:$0xff] }
  0x20   :  { %669 = vmatprep.subr.msk.bf16.mxu1 %vm747_vm1, %v667_v55  ;;  %v679_v16 = vpack.c.bf16 %v75_v12, %v74_v11  ;;  %v26_v17 = vld [vmem:[%s1031_s1 + $0x60] sm:$0xff]  ;;  %v27_v18 = vld [vmem:[%s1031_s1 + $0x68] sm:$0xff]  ;;  %v45_v22 = vld [vmem:[%s1031_s1 + $0xf8] sm:$0xff] }
  0x21   :  { %v58_v19 = vld [vmem:[%s1031_s1 + $0x160] sm:$0xff]  ;;  %v59_v20 = vld [vmem:[%s1031_s1 + $0x168] sm:$0xff]  ;;  %v76_v23 = vld [vmem:[%s1031_s1 + $0x1f0] sm:$0xff]  ;;  %v634_v25 = vpack.c.bf16 %v27_v18, %v26_v17  ;;  %v637_v27 = vpack.c.bf16 %v45_v22, %v44_v21 }
  0x22   :  { %v77_v24 = vld [vmem:[%s1031_s1 + $0x1f8] sm:$0xff]  ;;  %v682_v26 = vpack.c.bf16 %v59_v20, %v58_v19  ;;  %v28_v29 = vld [vmem:[%s1031_s1 + $0x70] sm:$0xff]  ;;  %v13_v35 = vld [vmem:[%s1030_s0 + $0x8] sm:$0xff] }
  0x23   :  { %v685_v28 = vpack.c.bf16 %v77_v24, %v76_v23  ;;  %v29_v30 = vld [vmem:[%s1031_s1 + $0x78] sm:$0xff]  ;;  %v60_v31 = vld [vmem:[%s1031_s1 + $0x170] sm:$0xff] }
  0x24   :  { %v61_v32 = vld [vmem:[%s1031_s1 + $0x178] sm:$0xff]  ;;  %v640_v33 = vpack.c.bf16 %v29_v30, %v28_v29  ;;  %s718_s1 = smov [#allocation2]  }
  0x25   :  { %v688_v34 = vpack.c.bf16 %v61_v32, %v60_v31  ;;  %s444_s29 = sshll.u32 %s718_s1, 4  ;;  %s445_s29 = int_to_ptr.vmem [resolvable:$true] %s444_s29 }
  0x26   :  { %624 = vmatpush3.bf16.xpose.msk.msra.mxu0 %vm747_vm1, %v622_v0  ;;  %s694_s0 = scalar_lea.vmem %s445_s29, 1024  ;;  %p699_p1 = scmp.lt.s32.totalorder %s445_s29, %s445_s29 }
  0x27   :  { %672 = vmatpush3.bf16.xpose.msk.msra.mxu1 %vm747_vm1, %v670_v1  ;;  %627 = vmatprep.subr.msk.bf16.mxu0 %vm747_vm1, %v625_v2  ;;  %p695_p0 = scmp.ne.s32.totalorder %s445_s29, %s694_s0  ;;  %p700_p2 = scmp.lt.s32.totalorder %s694_s0, %s694_s0 }
  0x28   :  { %675 = vmatprep.subr.msk.bf16.mxu1 %vm747_vm1, %v673_v3 }
  0x29   :  { %p701_p3 = por %p700_p2, %p699_p1 }
  0x2b   :  { %p702_p4 = pnand %p701_p3, %p695_p0 }
  0x2e   :  { %630 = vmatpush3.bf16.xpose.msk.msra.mxu0 %vm747_vm1, %v628_v13 }
  0x2f   :  { %678 = vmatpush3.bf16.xpose.msk.msra.mxu1 %vm747_vm1, %v676_v14  ;;  %633 = vmatprep.subr.msk.bf16.mxu0 %vm747_vm1, %v631_v15 }
  0x30   :  { %681 = vmatprep.subr.msk.bf16.mxu1 %vm747_vm1, %v679_v16 }
  0x36   :  { %636 = vmatpush3.bf16.xpose.msk.msra.mxu0 %vm747_vm1, %v634_v25 }
  0x37   :  { %684 = vmatpush3.bf16.xpose.msk.msra.mxu1 %vm747_vm1, %v682_v26  ;;  %639 = vmatprep.subr.msk.bf16.mxu0 %vm747_vm1, %v637_v27 }
  0x38   :  { %687 = vmatprep.subr.msk.bf16.mxu1 %vm747_vm1, %v685_v28 }
  0x3e   :  { %642 = vmatpush3.bf16.xpose.msk.msra.mxu0 %vm747_vm1, %v640_v33 }
  0x3f   :  { %690 = vmatpush3.bf16.xpose.msk.msra.mxu1 %vm747_vm1, %v688_v34 }
  0x45   :  { %556 = vmatmul.mubr.msk.f32.vlgmr.msra.gmra.mrb[0].mxu0 %vm78_vm0, %v862_v46 }
  0x46   :  { %592 = vmatmul.mubr.msk.f32.vlgmr.msra.gmra.mrb[0].mxu1 %vm78_vm0, %v862_v46  ;;  %557 = vmatprep.mubr.msk.f32.mxu0 %vm78_vm0, %v13_v35 }
  0x47   :  { %593 = vmatprep.mubr.msk.f32.mxu1 %vm78_vm0, %v13_v35 }
  0x49   :  { %558 = vmatmul.mubr.msk.f32.gmra.mrb[2].mxu0 %vm78_vm0, %v13_v35 }
  0x4a   :  { %594 = vmatmul.mubr.msk.f32.gmra.mrb[2].mxu1 %vm78_vm0, %v13_v35 }
 0x118   :  { %v343_v4 = vpop.f32.mrb[0].mxu0 }
 0x119   :  { %v420_v36 = vpop.f32.mrb[0].mxu1  ;;  %431 = vst [vmem:[#allocation2] sm:$0xff] %v343_v4  ;;  %v345_v37 = vpop.f32.mrb[1].mxu0 }
 0x11a   :  { %433 = vst [vmem:[#allocation2 + $0x10] sm:$0xff] %v420_v36  ;;  %v422_v38 = vpop.f32.mrb[1].mxu1  ;;  %432 = vst [vmem:[#allocation2 + $0x8] sm:$0xff] %v345_v37 }
 0x11b   :  { %434 = vst [vmem:[#allocation2 + $0x18] sm:$0xff] %v422_v38 }
 0x11c   :  { %v349_v39 = vpop.f32.mrb[2].mxu0 }
 0x11d   :  { %v426_v40 = vpop.f32.mrb[2].mxu1  ;;  %435 = vst [vmem:[#allocation2 + $0x20] sm:$0xff] %v349_v39  ;;  %v351_v41 = vpop.f32.mrb[3].mxu0 }
 0x11e   :  { %437 = vst [vmem:[#allocation2 + $0x30] sm:$0xff] %v426_v40  ;;  %v428_v42 = vpop.f32.mrb[3].mxu1  ;;  %436 = vst [vmem:[#allocation2 + $0x28] sm:$0xff] %v351_v41 }
 0x11f   :  { %438 = vst [vmem:[#allocation2 + $0x38] sm:$0xff] %v428_v42 }
 0x120   :  { %705 = shalt.err (!%p702_p4)
}
 0x121   :  { %s706_s4 = scalar_lea.hbm %s1032_s2, 1024 }
 0x122   :  { %p707_p5 = scmp.ne.s32.totalorder %s1032_s2, %s706_s4  ;;  %p710_p6 = scmp.lt.u32.totalorder %s706_s4, %s1032_s2 }
 0x124   :  { %p712_p7 = pnand %p710_p6, %p707_p5 }
 0x126   :  { %715 = shalt.err (!%p712_p7)
}
 0x127   :  { %s719_s9 = smov 512   ;;  %s720_s10 = smov 32  }
 0x128   :  { %450 = dma.vmem_to_hbm [thread:$0]  %s445_s29, 1024, %s1032_s2, [#allocation3], %s719_s9, %s719_s9, %s720_s10  }
 0x129   :  { %716 = dma.done.wait [#allocation3], 1024  }
 0x12a   :  { %717 = vsyncadd [#allocation3], 4294966272 }
 0x12b   :  { %454 = vsyncpa [#allocation3], 1 }

</bundles_post_ra>
